<compile_context>
chip_gen: v7x
topology: tpu7x:2x2x1
jax: 0.10.0
libtpu: 0.0.40
codegen_flags: <defaults>
</compile_context>

<pallas_src>
import functools

import jax
import jax.numpy as jnp
from jax.experimental import pallas as pl
from jax.experimental.pallas import tpu as pltpu

_NSEM = 16                    # outstanding row DMAs in the HBM-gather path (power of 2)
_MAX_TOKEN_TILE = 256         # tokens gathered per grid step
_ONEHOT_MAX_ROWS = 512        # one-hot MXU gather only for tiny vocabularies
_VMEM_FALLBACK_BYTES = 64 * 1024 * 1024   # v7x per-TC capacity (most conservative)


def _vmem_capacity_bytes():
    try:
        return int(pltpu.get_tpu_info().vmem_capacity_bytes)
    except Exception:
        return _VMEM_FALLBACK_BYTES


def _onehot_gather_kernel(ids_ref, w_ref, out_ref):
    """Tiny-vocab path: table resident in VMEM, gather via one-hot MXU matmul."""
    idx = ids_ref[...]                        # (T, 1) int32
    w = w_ref[...]                            # (V, D), resident across the whole grid
    t, v = idx.shape[0], w.shape[0]
    col = jax.lax.broadcasted_iota(jnp.int32, (t, v), 1)
    onehot = (col == idx).astype(w.dtype)     # exact 1.0 / 0.0 -> exact row select
    # HIGHEST only needed to keep f32 weights bit-exact; bf16 is exact at DEFAULT.
    prec = (jax.lax.Precision.HIGHEST if w.dtype == jnp.float32
            else jax.lax.Precision.DEFAULT)
    out_ref[...] = jnp.dot(
        onehot, w, precision=prec, preferred_element_type=jnp.float32,
    ).astype(out_ref.dtype)


def _vmem_gather_kernel(ids_ref, w_ref, out_ref, *, token_tile):
    """Medium-vocab path: table resident in VMEM; per-token dynamic row copy.

    O(T*D) vector loads/stores instead of O(T*V*D) MXU MACs. ids live in SMEM
    (scalar prefetch); rows are selected by dynamic indexing on the leading dim.
    """
    base = pl.program_id(0) * token_tile

    def body(t, carry):
        row = ids_ref[base + t]               # scalar id from SMEM
        out_ref[t] = w_ref[row]               # (1, D) VMEM row copy
        return carry

    jax.lax.fori_loop(0, token_tile, body, 0, unroll=8)


def _dma_gather_kernel(ids_ref, w_hbm, out_ref, sems, *, token_tile, nsem):
    """Large-vocab path: per-row HBM->VMEM DMAs (nsem outstanding), written
    directly into the (T, D) output tile."""
    base = pl.program_id(0) * token_tile

    def issue(row, t, slot):
        pltpu.make_async_copy(
            w_hbm.at[pl.ds(row, 1), :],
            out_ref.at[pl.ds(t, 1), :],
            sems.at[slot],
        ).start()

    def wait_row(t, slot):
        # Every row has the identical byte size (single dtype, fixed D), so a
        # row-0 src descriptor yields the correct transfer size for the wait.
        pltpu.make_async_copy(
            w_hbm.at[pl.ds(0, 1), :],
            out_ref.at[pl.ds(t, 1), :],
            sems.at[slot],
        ).wait()

    # Prologue: fill the pipeline with nsem in-flight row copies.
    for t in range(nsem):
        issue(ids_ref[base + t], t, t)

    # Steady state: read the next id BEFORE the wait (a DMA .wait() breaks SMEM
    # sst->sld forwarding), retire the copy holding this slot, then reuse it.
    def body(t, carry):
        slot = t & (nsem - 1)
        row = ids_ref[base + t]
        wait_row(t - nsem, slot)
        issue(row, t, slot)
        return carry

    jax.lax.fori_loop(nsem, token_tile, body, 0, unroll=8)

    # Epilogue: retire the last nsem copies before the tile is written back.
    for s in range(nsem):
        wait_row(token_tile - nsem + s, s)


def cpu_embedding_forward(ids, weight, *, path=None, token_tile=None):
    """Pallas embedding lookup: returns weight[ids] with shape ids.shape + (D,).

    path: None (auto), "onehot", "vmem", or "dma".
    """
    orig_shape = ids.shape
    V, D = weight.shape
    itemsize = jnp.dtype(weight.dtype).itemsize

    flat = ids.reshape(-1).astype(jnp.int32)
    N = int(flat.shape[0])

    if token_tile is None:
        token_tile = min(_MAX_TOKEN_TILE, max(_NSEM, -(-N // _NSEM) * _NSEM))
    T = int(token_tile)
    assert T % 8 == 0 and T % _NSEM == 0 and (_NSEM & (_NSEM - 1)) == 0

    num_tiles = -(-N // T)
    grid = (num_tiles,)
    n_pad = num_tiles * T
    if n_pad != N:
        # Only the (tiny) id vector is padded; the (N, D) output is NOT padded —
        # Pallas masks the ragged last output block, so there is no out[:N] copy.
        flat = jnp.pad(flat, (0, n_pad - N))   # pad with id 0 (always a valid row)

    table_bytes = V * D * itemsize
    cap = _vmem_capacity_bytes()
    # Table is double-buffered by BlockSpec even with a constant block index, plus
    # the double-buffered out tile and headroom for compiler scratch.
    resident_need = 2 * table_bytes + 4 * T * D * itemsize + (2 << 20)

    if path is None:
        budget = int(cap * 0.75)
        if V <= _ONEHOT_MAX_ROWS and resident_need + 2 * T * V * 4 <= budget:
            path = "onehot"
        elif resident_need <= budget:
            path = "vmem"
        else:
            path = "dma"

    if path in ("onehot", "vmem"):
        vmem_limit = min(int(cap * 0.9), max(resident_need + (8 << 20), 32 << 20))
        params = pltpu.CompilerParams(
            dimension_semantics=("parallel",), vmem_limit_bytes=int(vmem_limit))
    else:
        params = pltpu.CompilerParams(dimension_semantics=("parallel",))

    if path == "onehot":
        out = pl.pallas_call(
            _onehot_gather_kernel,
            out_shape=jax.ShapeDtypeStruct((N, D), weight.dtype),
            grid_spec=pltpu.PrefetchScalarGridSpec(
                num_scalar_prefetch=0,
                grid=grid,
                in_specs=[
                    pl.BlockSpec((T, 1), lambda i: (i, 0)),    # (T,) token ids per step
                    pl.BlockSpec((V, D), lambda i: (0, 0)),    # full table, fetched once
                ],
                out_specs=pl.BlockSpec((T, D), lambda i: (i, 0)),
            ),
            compiler_params=params,
        )(flat.reshape(n_pad, 1), weight)

    elif path == "vmem":
        kernel = functools.partial(_vmem_gather_kernel, token_tile=T)
        out = pl.pallas_call(
            kernel,
            out_shape=jax.ShapeDtypeStruct((N, 1, D), weight.dtype),
            grid_spec=pltpu.PrefetchScalarGridSpec(
                num_scalar_prefetch=1,                          # ids -> SMEM
                grid=grid,
                in_specs=[pl.BlockSpec((V, 1, D), lambda i, ids: (0, 0, 0))],
                out_specs=pl.BlockSpec((T, 1, D), lambda i, ids: (i, 0, 0)),
            ),
            compiler_params=params,
        )(flat, weight.reshape(V, 1, D))
        out = out.reshape(N, D)

    elif path == "dma":
        # TODO(synk): for very large N deliver ids per-tile (SMEM BlockSpec or chunked
        # pallas_calls) instead of scalar-prefetching the whole id vector into SMEM.
        kernel = functools.partial(_dma_gather_kernel, token_tile=T, nsem=_NSEM)
        out = pl.pallas_call(
            kernel,
            out_shape=jax.ShapeDtypeStruct((N, D), weight.dtype),
            grid_spec=pltpu.PrefetchScalarGridSpec(
                num_scalar_prefetch=1,                          # ids -> SMEM
                grid=grid,
                in_specs=[pl.BlockSpec(memory_space=pl.ANY)],   # weight stays in HBM
                out_specs=pl.BlockSpec((T, D), lambda i, ids: (i, 0)),
                scratch_shapes=[pltpu.SemaphoreType.DMA((_NSEM,))],
            ),
            compiler_params=params,
        )(flat, weight)
    else:
        raise ValueError(f"unknown gather path {path!r}")

    return out.reshape(orig_shape + (D,))


def make_embedding_weight(key, num_embeddings, embedding_dim, padding_idx=None,
                          dtype=jnp.float32):
    """Mirror CPUEmbedding.reset_parameters: N(0,1) init, padding row zeroed."""
    w = jax.random.normal(key, (num_embeddings, embedding_dim), dtype=jnp.float32)
    if padding_idx is not None:
        if padding_idx < 0:
            padding_idx = num_embeddings + padding_idx
        w = w.at[padding_idx].set(0.0)
    return w.astype(dtype)


if __name__ == "__main__":
    key = jax.random.PRNGKey(0)
    k_w, k_ids, k_ids2 = jax.random.split(key, 3)

    num_embeddings = 32
    embedding_dim = 128
    padding_idx = 0
    B, S = 2, 8

    weight = make_embedding_weight(k_w, num_embeddings, embedding_dim, padding_idx)
    ids = jax.random.randint(k_ids, (B, S), 0, num_embeddings, dtype=jnp.int32)
    ref = jnp.take(weight, ids, axis=0)

    # Auto path (tiny vocab -> one-hot MXU gather).
    out = jax.block_until_ready(cpu_embedding_forward(ids, weight))
    assert out.shape == (B, S, embedding_dim)
    assert jnp.allclose(out, ref, atol=1e-5, rtol=1e-5)

    # Force each gather path at small shapes to exercise all three kernels.
    for p in ("onehot", "vmem", "dma"):
        outp = jax.block_until_ready(cpu_embedding_forward(ids, weight, path=p))
        assert outp.shape == (B, S, embedding_dim), p
        assert jnp.allclose(outp, ref, atol=1e-5, rtol=1e-5), p

    # Ragged token count (N % token_tile != 0): exercises the masked last output
    # block that replaced the old out[:N] slice.
    ids_ragged = jax.random.randint(k_ids2, (3, 7), 0, num_embeddings, dtype=jnp.int32)
    ref_r = jnp.take(weight, ids_ragged, axis=0)
    for p in ("onehot", "vmem", "dma"):
        outr = jax.block_until_ready(cpu_embedding_forward(ids_ragged, weight, path=p))
        assert outr.shape == (3, 7, embedding_dim), p
        assert jnp.allclose(outr, ref_r, atol=1e-5, rtol=1e-5), p

    print("KERNEL_OK")
</pallas_src>

<mosaic_0001>
module attributes {stable_mosaic.version = 11 : i64} {
  func.func @_onehot_gather_kernel(%arg0: i32, %arg1: memref<16x1xi32, #tpu.memory_space<vmem>>, %arg2: memref<32x128xf32, #tpu.memory_space<vmem>>, %arg3: memref<16x128xf32, #tpu.memory_space<vmem>>) attributes {dimension_semantics = [#tpu.dimension_semantics<parallel>], iteration_bounds = array<i64: 1>, scalar_prefetch = 0 : i64, scratch_operands = 0 : i64, tpu.core_type = #tpu.core_type<tc>, window_params = [{transform_indices = @transform_0, window_bounds = array<i64: 16, 1>}, {pipeline_mode = #tpu.pipeline_mode<synchronous>, transform_indices = @transform_1, window_bounds = array<i64: 32, 128>}, {transform_indices = @transform_2, window_bounds = array<i64: 16, 128>}]} {
    %c0 = arith.constant 0 : index
    %c0_0 = arith.constant 0 : index
    %0 = vector.load %arg1[%c0, %c0_0] : memref<16x1xi32, #tpu.memory_space<vmem>>, vector<16x1xi32>
    %c0_1 = arith.constant 0 : index
    %c0_2 = arith.constant 0 : index
    %1 = vector.load %arg2[%c0_1, %c0_2] : memref<32x128xf32, #tpu.memory_space<vmem>>, vector<32x128xf32>
    %2 = tpu.iota {dimensions = array<i32: 1>} : vector<16x32xi32>
    %3 = vector.broadcast %0 : vector<16x1xi32> to vector<16x32xi32>
    %4 = arith.cmpi eq, %2, %3 : vector<16x32xi32>
    %5 = arith.extui %4 : vector<16x32xi1> to vector<16x32xi32>
    %6 = arith.sitofp %5 : vector<16x32xi32> to vector<16x32xf32>
    %cst = arith.constant dense<0.000000e+00> : vector<16x128xf32>
    %7 = tpu.matmul %6, %1, %cst {dimension_numbers = #tpu.dot_dimension_numbers<[1], [0], [0], [1], [0, 0, 1, 1], [], []>, precision = #tpu.contract_precision<fp32>} : vector<16x32xf32>, vector<32x128xf32>, vector<16x128xf32> -> vector<16x128xf32>
    %c0_3 = arith.constant 0 : index
    %c0_4 = arith.constant 0 : index
    %8 = vector.load %arg3[%c0_3, %c0_4] : memref<16x128xf32, #tpu.memory_space<vmem>>, vector<16x128xf32>
    tpu.vector_store %arg3[%c0_3, %c0_4], %7 {strides = array<i32>} : memref<16x128xf32, #tpu.memory_space<vmem>>, vector<16x128xf32>,
    return
  }
  func.func @transform_0(%arg0: i32) -> (i32, i32) {
    %c0_i32 = arith.constant 0 : i32
    %c0_i32_0 = arith.constant 0 : i32
    return %arg0, %c0_i32 : i32, i32
  }
  func.func @transform_1(%arg0: i32) -> (i32, i32) {
    %c0_i32 = arith.constant 0 : i32
    %c0_i32_0 = arith.constant 0 : i32
    %c0_i32_1 = arith.constant 0 : i32
    return %c0_i32, %c0_i32_0 : i32, i32
  }
  func.func @transform_2(%arg0: i32) -> (i32, i32) {
    %c0_i32 = arith.constant 0 : i32
    %c0_i32_0 = arith.constant 0 : i32
    return %arg0, %c0_i32 : i32, i32
  }
}

</mosaic_0001>

<bundles_post_ra>
// kernel: tpu_custom_call.1
= control target key start
LH: loop header
LB: loop body
LE: loop exit
PB: predicated region body
PF: predicated region fallthrough
CT: control target
= control target key end

     0   :  { %7 = vsyncpa [#allocation3], 0  ;;  %s904_s0 = inlined_call_operand.vmem [shape: s32[16,1], index: 0, kind: input, shape index: {}]   ;;  %s905_s1 = inlined_call_operand.hbm [shape: f32[32,128], index: 1, kind: input, shape index: {}]   ;;  %s906_s2 = inlined_call_operand.hbm [shape: f32[16,128], index: 2, kind: output, shape index: {}]  }
   0x1   :  { %8 = vsyncpa [#allocation4], 0  ;;  %s823_s9 = smov [#allocation2]   ;;  %s775_s13 = scalar_lea.hbm %s905_s1, 512 }
   0x2   :  { %s16_s10 = sshll.u32 %s823_s9, 4  ;;  %p776_p0 = scmp.ne.s32.totalorder %s905_s1, %s775_s13  ;;  %s17_s10 = int_to_ptr.vmem [resolvable:$true] %s16_s10 }
   0x3   :  { %p779_p1 = scmp.lt.u32.totalorder %s775_s13, %s905_s1 }
   0x5   :  { %p781_p2 = pnand %p779_p1, %p776_p0 }
   0x7   :  { %784 = shalt.err (!%p781_p2)
}
   0x8   :  { %s785_s18 = scalar_lea.vmem %s17_s10, 512  ;;  %p790_p4 = scmp.lt.s32.totalorder %s17_s10, %s17_s10 }
   0x9   :  { %p786_p3 = scmp.ne.s32.totalorder %s17_s10, %s785_s18  ;;  %p791_p5 = scmp.lt.s32.totalorder %s785_s18, %s785_s18 }
   0xb   :  { %p792_p6 = por %p791_p5, %p790_p4 }
   0xd   :  { %p793_p7 = pnand %p792_p6, %p786_p3 }
   0xf   :  { %796 = shalt.err (!%p793_p7)
}
  0x10   :  { %s824_s19 = smov 128   ;;  %s825_s20 = smov 8  }
  0x11   :  { %22 = dma.hbm_to_vmem [thread:$0]  %s905_s1, 512, %s17_s10, [#allocation3], %s824_s19, %s824_s19, %s825_s20  }
  0x12   :  { %819 = dma.done.wait [#allocation3], 512  }
  0x13   :  { %820 = vsyncadd [#allocation3], 4294966784  ;;  %v826_v0 = vmov 0   ;;  %v26_v1 = vld [vmem:[%s904_s0] sm:$0xff]  ;;  %v29_v3 = vld [vmem:[#allocation2 + $0x8] sm:$0xff]  ;;  %v32_v35 = vlaneseq  ;;  %vm46_vm0 = vcmask 261120  }
  0x14   :  { %774 = vset.pattern.permute.xlu0 %v826_v0  ;;  %v28_v2 = vld [vmem:[#allocation2] sm:$0xff]  ;;  %v27_v5 = vld [vmem:[%s904_s0 + $0x8] sm:$0xff]  ;;  %v57_v6 = vand.u32 4294901760, %v29_v3  ;;  %v30_v7 = vld [vmem:[#allocation2 + $0x10] sm:$0xff]  ;;  %v827_v38 = vmov 0.0   ;;  %s828_s0 = smov [#allocation5]  }
  0x15   :  { %35 = vperm.xlu0 %774, %v26_v1   ;;  %v54_v4 = vand.u32 4294901760, %v28_v2  ;;  %v31_v8 = vld [vmem:[#allocation2 + $0x18] sm:$0xff]  ;;  %v60_v10 = vand.u32 4294901760, %v30_v7  ;;  %v33_v36 = vand.u32 127, %v32_v35  ;;  %s588_s1 = sshll.u32 %s828_s0, 4  ;;  %s589_s1 = int_to_ptr.vmem [resolvable:$true] %s588_s1 }
  0x16   :  { %v63_v11 = vand.u32 4294901760, %v31_v8  ;;  %v151_v14 = vsub.f32 %v29_v3, %v57_v6  ;;  %s797_s27 = scalar_lea.vmem %s589_s1, 256  ;;  %p802_p9 = scmp.lt.s32.totalorder %s589_s1, %s589_s1 }
  0x17   :  { %v865_v9 = vpack.c.bf16 %v57_v6, %v54_v4  ;;  %v144_v13 = vsub.f32 %v28_v2, %v54_v4  ;;  %v158_v20 = vsub.f32 %v30_v7, %v60_v10  ;;  %p798_p8 = scmp.ne.s32.totalorder %s589_s1, %s797_s27  ;;  %p803_p10 = scmp.lt.s32.totalorder %s797_s27, %s797_s27 }
  0x18   :  { %v869_v12 = vpack.c.bf16 %v63_v11, %v60_v10  ;;  %v152_v16 = vand.u32 4294901760, %v151_v14  ;;  %v165_v21 = vsub.f32 %v31_v8, %v63_v11 }
  0x19   :  { %38 = vperm.xlu0 %774, %v27_v5   ;;  %735 = vmatprep.subr.bf16.mxu0 %v865_v9  ;;  %v145_v15 = vand.u32 4294901760, %v144_v13  ;;  %v159_v24 = vand.u32 4294901760, %v158_v20  ;;  %v726_v33 = vpack.c.bf16 %v151_v14, %v144_v13  ;;  %p804_p11 = por %p803_p10, %p802_p9 }
  0x1a   :  { %711 = vmatprep.subr.bf16.mxu1 %v865_v9  ;;  %737 = vmatpush3.bf16.msra.mxu0 %v865_v9  ;;  %v153_v19 = vsub.f32 %v151_v14, %v152_v16  ;;  %v166_v25 = vand.u32 4294901760, %v165_v21  ;;  %v730_v34 = vpack.c.bf16 %v165_v21, %v158_v20 }
  0x1b   :  { %713 = vmatpush3.bf16.msra.mxu1 %v865_v9  ;;  %739 = vmatprep.subr.bf16.mxu0 %v869_v12  ;;  %v742_v17 = vpack.c.bf16 %v152_v16, %v145_v15  ;;  %v146_v18 = vsub.f32 %v144_v13, %v145_v15  ;;  %v160_v28 = vsub.f32 %v158_v20, %v159_v24  ;;  %p805_p12 = pnand %p804_p11, %p798_p8 }
  0x1c   :  { %715 = vmatprep.subr.bf16.mxu1 %v869_v12  ;;  %v154_v23 = vand.u32 4294901760, %v153_v19  ;;  %v746_v27 = vpack.c.bf16 %v166_v25, %v159_v24  ;;  %v167_v29 = vsub.f32 %v165_v21, %v166_v25 }
  0x1d   :  { %v147_v22 = vand.u32 4294901760, %v146_v18  ;;  %v161_v30 = vand.u32 4294901760, %v160_v28 }
  0x1e   :  { %741 = vmatpush3.bf16.msra.mxu0 %v869_v12  ;;  %v168_v31 = vand.u32 4294901760, %v167_v29 }
  0x1f   :  { %717 = vmatpush3.bf16.msra.mxu1 %v869_v12  ;;  %743 = vmatprep.subr.bf16.mxu0 %v742_v17  ;;  %v718_v26 = vpack.c.bf16 %v154_v23, %v147_v22 }
  0x20   :  { %v722_v32 = vpack.c.bf16 %v168_v31, %v161_v30 }
  0x21   :  { %719 = vmatprep.subr.bf16.mxu1 %v718_v26 }
  0x94   :  { %v36_v37 = vpop.permute.xlu0 %35 }
  0x95   :  { %vm40_vm1 = vcmp.eq.s32.totalorder %v33_v36, %v36_v37 }
  0x96   :  { %v600_v39 = vsel %vm40_vm1, 1.0, %v827_v38 }
  0x97   :  { %v48_v40 = vsel %vm46_vm0, %v600_v39, 0 }
  0x98   :  { %v123_v41 = vsub.f32 %v48_v40, %v48_v40  ;;  %v39_v42 = vpop.permute.xlu0 %38 }
  0x99   :  { %vm41_vm2 = vcmp.eq.s32.totalorder %v33_v36, %v39_v42 }
  0x9a   :  { %v601_v43 = vsel %vm41_vm2, 1.0, %v827_v38  ;;  %v124_v44 = vand.u32 4294901760, %v123_v41 }
  0x9b   :  { %v51_v45 = vsel %vm46_vm0, %v601_v43, 0 }
  0x9c   :  { %v133_v46 = vsub.f32 %v51_v45, %v51_v45  ;;  %685 = vmatprep.mubr.f32.mxu0 %v124_v44  ;;  %v125_v47 = vsub.f32 %v123_v41, %v124_v44 }
  0x9e   :  { %v126_v48 = vand.u32 4294901760, %v125_v47  ;;  %v134_v49 = vand.u32 4294901760, %v133_v46 }
  0xa0   :  { %652 = vmatprep.mubr.f32.mxu1 %v126_v48  ;;  %686 = vmatmul.mubr.f32.vlgmr.msra.gmra.mrb[0].mxu0 %v134_v49  ;;  %v135_v50 = vsub.f32 %v133_v46, %v134_v49 }
  0xa1   :  { %745 = vmatpush3.bf16.msra.mxu0 %v742_v17  ;;  %696 = vmatprep.mubr.msk.f32.mxu0 %vm46_vm0, %v600_v39 }
  0xa2   :  { %v136_v51 = vand.u32 4294901760, %v135_v50  ;;  %747 = vmatprep.subr.bf16.mxu0 %v746_v27 }
  0xa4   :  { %653 = vmatmul.mubr.f32.vlgmr.msra.gmra.mrb[0].mxu1 %v136_v51 }
  0xa5   :  { %721 = vmatpush3.bf16.msra.mxu1 %v718_v26  ;;  %663 = vmatprep.mubr.msk.f32.mxu1 %vm46_vm0, %v600_v39 }
  0xa6   :  { %749 = vmatpush3.bf16.msra.mxu0 %v746_v27  ;;  %723 = vmatprep.subr.bf16.mxu1 %v722_v32 }
  0xa7   :  { %751 = vmatprep.subr.bf16.mxu0 %v865_v9 }
  0xa9   :  { %725 = vmatpush3.bf16.msra.mxu1 %v722_v32  ;;  %697 = vmatmul.mubr.msk.f32.vlgmr.msra.gmra.mrb[0].mxu0 %vm46_vm0, %v601_v43 }
  0xaa   :  { %753 = vmatpush3.bf16.msra.mxu0 %v865_v9  ;;  %707 = vmatprep.mubr.msk.f32.mxu0 %vm46_vm0, %v600_v39 }
  0xab   :  { %727 = vmatprep.subr.bf16.mxu1 %v726_v33  ;;  %755 = vmatprep.subr.bf16.mxu0 %v869_v12 }
  0xac   :  { %664 = vmatmul.mubr.msk.f32.vlgmr.msra.gmra.mrb[0].mxu1 %vm46_vm0, %v601_v43 }
  0xad   :  { %729 = vmatpush3.bf16.msra.mxu1 %v726_v33  ;;  %674 = vmatprep.mubr.f32.mxu1 %v123_v41 }
  0xae   :  { %757 = vmatpush3.bf16.msra.mxu0 %v869_v12  ;;  %731 = vmatprep.subr.bf16.mxu1 %v730_v34 }
  0xb1   :  { %733 = vmatpush3.bf16.msra.mxu1 %v730_v34  ;;  %708 = vmatmul.mubr.msk.f32.vlgmr.msra.gmra.mrb[0].mxu0 %vm46_vm0, %v601_v43 }
  0xb4   :  { %675 = vmatmul.mubr.f32.vlgmr.msra.gmra.mrb[0].mxu1 %v133_v46 }
 0x184   :  { %v709_v52 = vpop.f32.mrb[0].mxu0 }
 0x185   :  { %v571_v53 = vpop.f32.mrb[1].mxu0 }
 0x187   :  { %v676_v54 = vpop.f32.mrb[0].mxu1 }
 0x188   :  { %v758_v55 = vadd.f32 %v709_v52, %v676_v54  ;;  %v315_v56 = vpop.f32.mrb[1].mxu1 }
 0x189   :  { %v759_v57 = vadd.f32 %v571_v53, %v315_v56 }
 0x18a   :  { %582 = vst [vmem:[#allocation5 + $0x8] sm:$0xff] %v758_v55 }
 0x18b   :  { %581 = vst [vmem:[#allocation5] sm:$0xff] %v759_v57 }
 0x18c   :  { %808 = shalt.err (!%p805_p12)
}
 0x18d   :  { %s809_s30 = scalar_lea.hbm %s906_s2, 256 }
 0x18e   :  { %p810_p13 = scmp.ne.s32.totalorder %s906_s2, %s809_s30  ;;  %p813_p0 = scmp.lt.u32.totalorder %s809_s30, %s906_s2 }
 0x190   :  { %p815_p1 = pnand %p813_p0, %p810_p13 }
 0x192   :  { %818 = shalt.err (!%p815_p1)
}
 0x193   :  { %594 = dma.vmem_to_hbm [thread:$0]  %s589_s1, 256, %s906_s2, [#allocation4], %s824_s19, %s824_s19, %s825_s20  }
 0x194   :  { %821 = dma.done.wait [#allocation4], 256  }
 0x195   :  { %822 = vsyncadd [#allocation4], 4294967040 }
 0x196   :  { %598 = vsyncpa [#allocation3], 1 }
 0x197   :  { %599 = vsyncpa [#allocation4], 1 }

</bundles_post_ra>
